<compile_context>
chip_gen: v7x
topology: tpu7x:2x2x1
jax: 0.10.0
libtpu: 0.0.40
codegen_flags: <defaults>
</compile_context>

<pallas_src>
import functools

import numpy as np
import jax
import jax.numpy as jnp
from jax.experimental import pallas as pl
from jax.experimental.pallas import tpu as pltpu


def _round_up(n, m):
    return ((n + m - 1) // m) * m


def _pad_to(a, shape):
    return jnp.pad(a, [(0, s - d) for d, s in zip(a.shape, shape)])


def wavenet_kernel(dilations, kernel_size, prefix,
                   x_ref, cw_ref, cb_ref, rw_ref, rb_ref, gw_ref, yb_ref,
                   y_ref, xbuf_ref):
    """Fused forward for one batch tile (grid axis 0 = batch tiles).

    Shapes (per grid step), all channel dims padded to Cp = multiple of 128:
      x_ref  : (bt, T, Cp)
      cw_ref : (NB, K*Cp, Cp)   causal conv weights, taps stacked on rows
      cb_ref : (NB, 1, Cp)
      rw_ref : (NB, Cp, Cp)     residual 1x1 conv weights (pre-transposed)
      rb_ref : (NB, 1, Cp)
      gw_ref : (NB, Cp, Cp)     folded skip@final weights  (sw_i @ fw_i)
      yb_ref : (1, Cp)          folded final bias  fb + sum_i sb_i @ fw_i
      y_ref  : (bt, T, Cp)
      xbuf_ref (scratch): (bt, prefix + T, Cp)  zero causal prefix + running x
    """
    bt, T, cp = x_ref.shape
    nb = len(dilations)

    # Running signal stays in vregs between blocks; the VMEM buffer only
    # exists to serve the causally-shifted (zero-prefixed) tap reads.
    x_cur = x_ref[...].reshape(bt * T, cp)

    # (Done every grid step: with "parallel" semantics each core has its own
    #  scratch, so a program_id==0 guard would be unsafe; this is tiny anyway.)
    if prefix > 0:
        xbuf_ref[:, 0:prefix, :] = jnp.zeros((bt, prefix, cp), jnp.float32)
        xbuf_ref[:, prefix:, :] = x_ref[...]

    # Folded final-conv accumulator (bias already includes sum_i sb_i @ fw_i).
    y = yb_ref[...]  # (1, Cp), broadcasts against (bt*T, Cp)

    for i, d in enumerate(dilations):
        # Build the folded tap input (bt*T, K*Cp): tap k reads x shifted by
        # (K-1-k)*d via the zero prefix; lane-concat of 128-aligned chunks.
        taps = []
        for k in range(kernel_size):
            shift = (kernel_size - 1 - k) * d
            if shift == 0:
                taps.append(x_cur)
            else:
                start = prefix - shift
                taps.append(
                    xbuf_ref[:, start:start + T, :].reshape(bt * T, cp))
        x_cat = taps[0] if kernel_size == 1 else jnp.concatenate(taps, axis=1)

        # One MXU matmul per block for the causal dilated conv.
        acc = jnp.dot(x_cat, cw_ref[i],
                      preferred_element_type=jnp.float32) + cb_ref[i]
        out = jnp.tanh(acc)                                   # (bt*T, Cp)

        residual = jnp.dot(out, rw_ref[i],
                           preferred_element_type=jnp.float32) + rb_ref[i]
        x_cur = x_cur + residual
        # Only later blocks' shifted taps need the updated signal in VMEM.
        if prefix > 0 and i + 1 < nb:
            xbuf_ref[:, prefix:, :] = x_cur.reshape(bt, T, cp)

        # Folded skip+final contribution for this block.
        y = y + jnp.dot(out, gw_ref[i], preferred_element_type=jnp.float32)

    y_ref[...] = y.reshape(bt, T, cp).astype(y_ref.dtype)


def simple_wavenet(x_nct, params, dilations, kernel_size, batch_tile=None):
    """x_nct: (B, Cin, T) float32 (PyTorch NCW). Returns (B, Cfin, T)."""
    cw, cb, rw, rb, sw, sb, fw, fb = params
    B, cin, T = x_nct.shape
    nb = cw.shape[0]
    cout = cw.shape[-1]
    cfin = fw.shape[-1]

    lane, sub = 128, 8
    cp = _round_up(max(cin, cout, cfin), lane)   # common padded channel width
    Tp = _round_up(T, sub)

    max_shift = (kernel_size - 1) * max(dilations)
    prefix = _round_up(max_shift, sub) if max_shift > 0 else 0

    if batch_tile is None:
        # Keep >=2 grid steps when possible so the "parallel" batch axis can
        # be sharded across v7x's two TensorCores, while folding any extra
        # batch into the matmul M dimension.
        batch_tile = max(1, B // 2) if B % 2 == 0 else 1
    assert B % batch_tile == 0
    bt = batch_tile

    # Pad + pre-pack weights for the lane-dense (T, C) layout; taps stacked
    # along rows so the kernel does a single (bt*T, K*Cp) @ (K*Cp, Cp) matmul.
    cw_p = _pad_to(cw, (nb, kernel_size, cp, cp)).reshape(nb, kernel_size * cp, cp)
    cb_p = _pad_to(cb, (nb, 1, cp))
    rw_p = _pad_to(rw, (nb, cp, cp))
    rb_p = _pad_to(rb, (nb, 1, cp))
    sw_p = _pad_to(sw, (nb, cp, cp))
    sb_p = _pad_to(sb, (nb, 1, cp))
    fw_p = _pad_to(fw, (nb, cp, cp))
    fb_p = _pad_to(fb, (1, cp))

    # Fold skip_conv + final_conv (exact f32 re-association):
    #   y = fb + sum_i (out_i @ sw_i + sb_i) @ fw_i
    #     = [fb + sum_i sb_i @ fw_i]  +  sum_i out_i @ (sw_i @ fw_i)
    gw_p = jnp.einsum('nij,njk->nik', sw_p, fw_p)                  # (nb, Cp, Cp)
    yb_p = fb_p + jnp.einsum('nij,njk->ik', sb_p, fw_p)            # (1, Cp)

    x_btc = jnp.transpose(x_nct, (0, 2, 1))          # (B, T, Cin)
    x_p = _pad_to(x_btc, (B, Tp, cp))                # lane-dense input

    kernel = functools.partial(wavenet_kernel, tuple(dilations),
                               kernel_size, prefix)

    def full_spec(a):
        return pl.BlockSpec(a.shape, lambda b, n=a.ndim: (0,) * n)

    weight_bytes = 4 * (cw_p.size + cb_p.size + rw_p.size + rb_p.size
                        + gw_p.size + yb_p.size)
    cost = pl.CostEstimate(
        flops=2 * B * Tp * nb * (kernel_size + 2) * cp * cp,
        transcendentals=B * Tp * nb * cp,
        bytes_accessed=4 * x_p.size + weight_bytes + 4 * B * Tp * cp,
    )

    y_p = pl.pallas_call(
        kernel,
        out_shape=jax.ShapeDtypeStruct((B, Tp, cp), jnp.float32),
        grid=(B // bt,),
        in_specs=[
            pl.BlockSpec((bt, Tp, cp), lambda b: (b, 0, 0)),
            full_spec(cw_p), full_spec(cb_p),
            full_spec(rw_p), full_spec(rb_p),
            full_spec(gw_p), full_spec(yb_p),
        ],
        out_specs=pl.BlockSpec((bt, Tp, cp), lambda b: (b, 0, 0)),
        scratch_shapes=[pltpu.VMEM((bt, prefix + Tp, cp), jnp.float32)],
        compiler_params=pltpu.CompilerParams(
            dimension_semantics=("parallel",)),
        cost_estimate=cost,
    )(x_p, cw_p, cb_p, rw_p, rb_p, gw_p, yb_p)

    # Drop channel/time padding, back to NCW.
    return jnp.transpose(y_p[:, :T, :cfin], (0, 2, 1))  # (B, Cfin, T)


def init_params(key, in_ch, out_ch, kernel_size, dilations):
    """Deterministic synthetic parameters.

    Stored pre-transposed for the (B, T, C) kernel layout:
      cw[i, k] == torch causal conv.weight[:, :, k].T           (Cin, Cout)
      rw[i]    == torch residual_conv.weight[:, :, 0].T          (Cout, Cin)
      sw[i]    == torch skip_conv.weight[:, :, 0].T              (Cout, Cin)
      fw[i]    == torch final_conv.weight[:, i*Cin:(i+1)*Cin, 0].T  (Cin, Cout)
    """
    nb = len(dilations)
    ks = jax.random.split(key, 8)
    s = 0.1
    cw = s * jax.random.normal(ks[0], (nb, kernel_size, in_ch, out_ch), jnp.float32)
    cb = s * jax.random.normal(ks[1], (nb, 1, out_ch), jnp.float32)
    rw = s * jax.random.normal(ks[2], (nb, out_ch, in_ch), jnp.float32)
    rb = s * jax.random.normal(ks[3], (nb, 1, in_ch), jnp.float32)
    sw = s * jax.random.normal(ks[4], (nb, out_ch, in_ch), jnp.float32)
    sb = s * jax.random.normal(ks[5], (nb, 1, in_ch), jnp.float32)
    fw = s * jax.random.normal(ks[6], (nb, in_ch, out_ch), jnp.float32)
    fb = s * jax.random.normal(ks[7], (1, out_ch), jnp.float32)
    return (cw, cb, rw, rb, sw, sb, fw, fb)


def ref_forward(x_nct, params, dilations, kernel_size):
    """Plain-JAX reference matching the PyTorch module semantics."""
    cw, cb, rw, rb, sw, sb, fw, fb = params
    x = jnp.transpose(x_nct, (0, 2, 1))  # (B, T, Cin)
    B, T, cin = x.shape
    skips = []
    for i, d in enumerate(dilations):
        acc = cb[i][None]  # (1, 1, Cout)
        for k in range(kernel_size):
            shift = (kernel_size - 1 - k) * d
            if shift == 0:
                xs = x
            else:
                xs = jnp.pad(x[:, :T - shift, :], ((0, 0), (shift, 0), (0, 0)))
            acc = acc + jnp.einsum('btc,cd->btd', xs, cw[i, k])
        out = jnp.tanh(acc)
        residual = jnp.einsum('btc,cd->btd', out, rw[i]) + rb[i][None]
        skip = jnp.einsum('btc,cd->btd', out, sw[i]) + sb[i][None]
        x = residual + x
        skips.append(skip)
    y = fb[None]
    for i in range(len(dilations)):
        y = y + jnp.einsum('btc,cd->btd', skips[i], fw[i])
    return jnp.transpose(y, (0, 2, 1))  # (B, Cfin, T)


if __name__ == "__main__":
    B, IN_CH, OUT_CH, K, T = 2, 4, 8, 2, 16
    DILATIONS = (1, 2, 4)

    key = jax.random.PRNGKey(0)
    kx, kp = jax.random.split(key)
    x = jax.random.normal(kx, (B, IN_CH, T), jnp.float32)
    params = init_params(kp, IN_CH, OUT_CH, K, DILATIONS)

    fwd = jax.jit(simple_wavenet, static_argnums=(2, 3))
    y = fwd(x, params, DILATIONS, K)
    y = jax.block_until_ready(y)

    assert y.shape == (B, OUT_CH, T)
    y_ref = ref_forward(x, params, DILATIONS, K)
    np.testing.assert_allclose(np.asarray(y), np.asarray(y_ref),
                               rtol=1e-3, atol=1e-3)
    print("KERNEL_OK")
</pallas_src>

<mosaic_0001>
module attributes {stable_mosaic.version = 11 : i64} {
  func.func @wavenet_kernel(%arg0: i32, %arg1: memref<1x16x128xf32, #tpu.memory_space<vmem>>, %arg2: memref<3x256x128xf32, #tpu.memory_space<vmem>>, %arg3: memref<3x1x128xf32, #tpu.memory_space<vmem>>, %arg4: memref<3x128x128xf32, #tpu.memory_space<vmem>>, %arg5: memref<3x1x128xf32, #tpu.memory_space<vmem>>, %arg6: memref<3x128x128xf32, #tpu.memory_space<vmem>>, %arg7: memref<1x128xf32, #tpu.memory_space<vmem>>, %arg8: memref<1x16x128xf32, #tpu.memory_space<vmem>>, %arg9: memref<1x24x128xf32, #tpu.memory_space<vmem>>) attributes {dimension_semantics = [#tpu.dimension_semantics<parallel>], iteration_bounds = array<i64: 2>, scalar_prefetch = 0 : i64, scratch_operands = 1 : i64, tpu.core_type = #tpu.core_type<tc>, window_params = [{transform_indices = @transform_0, window_bounds = array<i64: 1, 16, 128>}, {pipeline_mode = #tpu.pipeline_mode<synchronous>, transform_indices = @transform_1, window_bounds = array<i64: 3, 256, 128>}, {pipeline_mode = #tpu.pipeline_mode<synchronous>, transform_indices = @transform_2, window_bounds = array<i64: 3, 1, 128>}, {pipeline_mode = #tpu.pipeline_mode<synchronous>, transform_indices = @transform_3, window_bounds = array<i64: 3, 128, 128>}, {pipeline_mode = #tpu.pipeline_mode<synchronous>, transform_indices = @transform_4, window_bounds = array<i64: 3, 1, 128>}, {pipeline_mode = #tpu.pipeline_mode<synchronous>, transform_indices = @transform_5, window_bounds = array<i64: 3, 128, 128>}, {pipeline_mode = #tpu.pipeline_mode<synchronous>, transform_indices = @transform_6, window_bounds = array<i64: 1, 128>}, {transform_indices = @transform_7, window_bounds = array<i64: 1, 16, 128>}]} {
    %c0 = arith.constant 0 : index
    %c0_0 = arith.constant 0 : index
    %c0_1 = arith.constant 0 : index
    %0 = vector.load %arg1[%c0, %c0_0, %c0_1] : memref<1x16x128xf32, #tpu.memory_space<vmem>>, vector<1x16x128xf32>
    %1 = vector.shape_cast %0 : vector<1x16x128xf32> to vector<16x128xf32>
    %cst = arith.constant 0.000000e+00 : f32
    %2 = vector.broadcast %cst : f32 to vector<1x8x128xf32>
    %c0_2 = arith.constant 0 : index
    %c0_3 = arith.constant 0 : index
    %c0_4 = arith.constant 0 : index
    %3 = vector.load %arg9[%c0_2, %c0_3, %c0_4] : memref<1x24x128xf32, #tpu.memory_space<vmem>>, vector<1x8x128xf32>
    tpu.vector_store %arg9[%c0_2, %c0_3, %c0_4], %2 {strides = array<i32>} : memref<1x24x128xf32, #tpu.memory_space<vmem>>, vector<1x8x128xf32>,
    %c0_5 = arith.constant 0 : index
    %c0_6 = arith.constant 0 : index
    %c0_7 = arith.constant 0 : index
    %4 = vector.load %arg1[%c0_5, %c0_6, %c0_7] : memref<1x16x128xf32, #tpu.memory_space<vmem>>, vector<1x16x128xf32>
    %c0_8 = arith.constant 0 : index
    %c8 = arith.constant 8 : index
    %c0_9 = arith.constant 0 : index
    %5 = vector.load %arg9[%c0_8, %c8, %c0_9] : memref<1x24x128xf32, #tpu.memory_space<vmem>>, vector<1x16x128xf32>
    tpu.vector_store %arg9[%c0_8, %c8, %c0_9], %4 {strides = array<i32>} : memref<1x24x128xf32, #tpu.memory_space<vmem>>, vector<1x16x128xf32>,
    %c0_10 = arith.constant 0 : index
    %c0_11 = arith.constant 0 : index
    %6 = vector.load %arg7[%c0_10, %c0_11] : memref<1x128xf32, #tpu.memory_space<vmem>>, vector<1x128xf32>
    %c0_12 = arith.constant 0 : index
    %c7 = arith.constant 7 : index
    %c0_13 = arith.constant 0 : index
    %7 = vector.load %arg9[%c0_12, %c7, %c0_13] : memref<1x24x128xf32, #tpu.memory_space<vmem>>, vector<1x16x128xf32>
    %8 = vector.shape_cast %7 : vector<1x16x128xf32> to vector<16x128xf32>
    %9 = tpu.concatenate %8, %1 in 1 : vector<16x128xf32>, vector<16x128xf32> -> vector<16x256xf32>
    %c0_14 = arith.constant 0 : index
    %c0_15 = arith.constant 0 : index
    %c0_16 = arith.constant 0 : index
    %10 = vector.load %arg2[%c0_14, %c0_15, %c0_16] : memref<3x256x128xf32, #tpu.memory_space<vmem>>, vector<1x256x128xf32>
    %11 = vector.shape_cast %10 : vector<1x256x128xf32> to vector<256x128xf32>
    %cst_17 = arith.constant dense<0.000000e+00> : vector<16x128xf32>
    %12 = tpu.matmul %9, %11, %cst_17 {dimension_numbers = #tpu.dot_dimension_numbers<[1], [0], [0], [1], [0, 0, 1, 1], [], []>} : vector<16x256xf32>, vector<256x128xf32>, vector<16x128xf32> -> vector<16x128xf32>
    %c0_18 = arith.constant 0 : index
    %c0_19 = arith.constant 0 : index
    %c0_20 = arith.constant 0 : index
    %13 = vector.load %arg3[%c0_18, %c0_19, %c0_20] : memref<3x1x128xf32, #tpu.memory_space<vmem>>, vector<1x1x128xf32>
    %14 = vector.shape_cast %13 : vector<1x1x128xf32> to vector<1x128xf32>
    %15 = vector.broadcast %14 : vector<1x128xf32> to vector<16x128xf32>
    %16 = arith.addf %12, %15 : vector<16x128xf32>
    %17 = math.tanh %16 : vector<16x128xf32>
    %c0_21 = arith.constant 0 : index
    %c0_22 = arith.constant 0 : index
    %c0_23 = arith.constant 0 : index
    %18 = vector.load %arg4[%c0_21, %c0_22, %c0_23] : memref<3x128x128xf32, #tpu.memory_space<vmem>>, vector<1x128x128xf32>
    %19 = vector.shape_cast %18 : vector<1x128x128xf32> to vector<128x128xf32>
    %cst_24 = arith.constant dense<0.000000e+00> : vector<16x128xf32>
    %20 = tpu.matmul %17, %19, %cst_24 {dimension_numbers = #tpu.dot_dimension_numbers<[1], [0], [0], [1], [0, 0, 1, 1], [], []>} : vector<16x128xf32>, vector<128x128xf32>, vector<16x128xf32> -> vector<16x128xf32>
    %c0_25 = arith.constant 0 : index
    %c0_26 = arith.constant 0 : index
    %c0_27 = arith.constant 0 : index
    %21 = vector.load %arg5[%c0_25, %c0_26, %c0_27] : memref<3x1x128xf32, #tpu.memory_space<vmem>>, vector<1x1x128xf32>
    %22 = vector.shape_cast %21 : vector<1x1x128xf32> to vector<1x128xf32>
    %23 = vector.broadcast %22 : vector<1x128xf32> to vector<16x128xf32>
    %24 = arith.addf %20, %23 : vector<16x128xf32>
    %25 = arith.addf %1, %24 : vector<16x128xf32>
    %26 = vector.shape_cast %25 : vector<16x128xf32> to vector<1x16x128xf32>
    %c0_28 = arith.constant 0 : index
    %c8_29 = arith.constant 8 : index
    %c0_30 = arith.constant 0 : index
    %27 = vector.load %arg9[%c0_28, %c8_29, %c0_30] : memref<1x24x128xf32, #tpu.memory_space<vmem>>, vector<1x16x128xf32>
    tpu.vector_store %arg9[%c0_28, %c8_29, %c0_30], %26 {strides = array<i32>} : memref<1x24x128xf32, #tpu.memory_space<vmem>>, vector<1x16x128xf32>,
    %c0_31 = arith.constant 0 : index
    %c0_32 = arith.constant 0 : index
    %c0_33 = arith.constant 0 : index
    %28 = vector.load %arg6[%c0_31, %c0_32, %c0_33] : memref<3x128x128xf32, #tpu.memory_space<vmem>>, vector<1x128x128xf32>
    %29 = vector.shape_cast %28 : vector<1x128x128xf32> to vector<128x128xf32>
    %cst_34 = arith.constant dense<0.000000e+00> : vector<16x128xf32>
    %30 = tpu.matmul %17, %29, %cst_34 {dimension_numbers = #tpu.dot_dimension_numbers<[1], [0], [0], [1], [0, 0, 1, 1], [], []>} : vector<16x128xf32>, vector<128x128xf32>, vector<16x128xf32> -> vector<16x128xf32>
    %31 = vector.broadcast %6 : vector<1x128xf32> to vector<16x128xf32>
    %32 = arith.addf %31, %30 : vector<16x128xf32>
    %c0_35 = arith.constant 0 : index
    %c6 = arith.constant 6 : index
    %c0_36 = arith.constant 0 : index
    %33 = vector.load %arg9[%c0_35, %c6, %c0_36] : memref<1x24x128xf32, #tpu.memory_space<vmem>>, vector<1x16x128xf32>
    %34 = vector.shape_cast %33 : vector<1x16x128xf32> to vector<16x128xf32>
    %35 = tpu.concatenate %34, %25 in 1 : vector<16x128xf32>, vector<16x128xf32> -> vector<16x256xf32>
    %c1 = arith.constant 1 : index
    %c0_37 = arith.constant 0 : index
    %c0_38 = arith.constant 0 : index
    %36 = vector.load %arg2[%c1, %c0_37, %c0_38] : memref<3x256x128xf32, #tpu.memory_space<vmem>>, vector<1x256x128xf32>
    %37 = vector.shape_cast %36 : vector<1x256x128xf32> to vector<256x128xf32>
    %cst_39 = arith.constant dense<0.000000e+00> : vector<16x128xf32>
    %38 = tpu.matmul %35, %37, %cst_39 {dimension_numbers = #tpu.dot_dimension_numbers<[1], [0], [0], [1], [0, 0, 1, 1], [], []>} : vector<16x256xf32>, vector<256x128xf32>, vector<16x128xf32> -> vector<16x128xf32>
    %c1_40 = arith.constant 1 : index
    %c0_41 = arith.constant 0 : index
    %c0_42 = arith.constant 0 : index
    %39 = vector.load %arg3[%c1_40, %c0_41, %c0_42] : memref<3x1x128xf32, #tpu.memory_space<vmem>>, vector<1x1x128xf32>
    %40 = vector.shape_cast %39 : vector<1x1x128xf32> to vector<1x128xf32>
    %41 = vector.broadcast %40 : vector<1x128xf32> to vector<16x128xf32>
    %42 = arith.addf %38, %41 : vector<16x128xf32>
    %43 = math.tanh %42 : vector<16x128xf32>
    %c1_43 = arith.constant 1 : index
    %c0_44 = arith.constant 0 : index
    %c0_45 = arith.constant 0 : index
    %44 = vector.load %arg4[%c1_43, %c0_44, %c0_45] : memref<3x128x128xf32, #tpu.memory_space<vmem>>, vector<1x128x128xf32>
    %45 = vector.shape_cast %44 : vector<1x128x128xf32> to vector<128x128xf32>
    %cst_46 = arith.constant dense<0.000000e+00> : vector<16x128xf32>
    %46 = tpu.matmul %43, %45, %cst_46 {dimension_numbers = #tpu.dot_dimension_numbers<[1], [0], [0], [1], [0, 0, 1, 1], [], []>} : vector<16x128xf32>, vector<128x128xf32>, vector<16x128xf32> -> vector<16x128xf32>
    %c1_47 = arith.constant 1 : index
    %c0_48 = arith.constant 0 : index
    %c0_49 = arith.constant 0 : index
    %47 = vector.load %arg5[%c1_47, %c0_48, %c0_49] : memref<3x1x128xf32, #tpu.memory_space<vmem>>, vector<1x1x128xf32>
    %48 = vector.shape_cast %47 : vector<1x1x128xf32> to vector<1x128xf32>
    %49 = vector.broadcast %48 : vector<1x128xf32> to vector<16x128xf32>
    %50 = arith.addf %46, %49 : vector<16x128xf32>
    %51 = arith.addf %25, %50 : vector<16x128xf32>
    %52 = vector.shape_cast %51 : vector<16x128xf32> to vector<1x16x128xf32>
    %c0_50 = arith.constant 0 : index
    %c8_51 = arith.constant 8 : index
    %c0_52 = arith.constant 0 : index
    %53 = vector.load %arg9[%c0_50, %c8_51, %c0_52] : memref<1x24x128xf32, #tpu.memory_space<vmem>>, vector<1x16x128xf32>
    tpu.vector_store %arg9[%c0_50, %c8_51, %c0_52], %52 {strides = array<i32>} : memref<1x24x128xf32, #tpu.memory_space<vmem>>, vector<1x16x128xf32>,
    %c1_53 = arith.constant 1 : index
    %c0_54 = arith.constant 0 : index
    %c0_55 = arith.constant 0 : index
    %54 = vector.load %arg6[%c1_53, %c0_54, %c0_55] : memref<3x128x128xf32, #tpu.memory_space<vmem>>, vector<1x128x128xf32>
    %55 = vector.shape_cast %54 : vector<1x128x128xf32> to vector<128x128xf32>
    %cst_56 = arith.constant dense<0.000000e+00> : vector<16x128xf32>
    %56 = tpu.matmul %43, %55, %cst_56 {dimension_numbers = #tpu.dot_dimension_numbers<[1], [0], [0], [1], [0, 0, 1, 1], [], []>} : vector<16x128xf32>, vector<128x128xf32>, vector<16x128xf32> -> vector<16x128xf32>
    %57 = arith.addf %32, %56 : vector<16x128xf32>
    %c0_57 = arith.constant 0 : index
    %c4 = arith.constant 4 : index
    %c0_58 = arith.constant 0 : index
    %58 = vector.load %arg9[%c0_57, %c4, %c0_58] : memref<1x24x128xf32, #tpu.memory_space<vmem>>, vector<1x16x128xf32>
    %59 = vector.shape_cast %58 : vector<1x16x128xf32> to vector<16x128xf32>
    %60 = tpu.concatenate %59, %51 in 1 : vector<16x128xf32>, vector<16x128xf32> -> vector<16x256xf32>
    %c2 = arith.constant 2 : index
    %c0_59 = arith.constant 0 : index
    %c0_60 = arith.constant 0 : index
    %61 = vector.load %arg2[%c2, %c0_59, %c0_60] : memref<3x256x128xf32, #tpu.memory_space<vmem>>, vector<1x256x128xf32>
    %62 = vector.shape_cast %61 : vector<1x256x128xf32> to vector<256x128xf32>
    %cst_61 = arith.constant dense<0.000000e+00> : vector<16x128xf32>
    %63 = tpu.matmul %60, %62, %cst_61 {dimension_numbers = #tpu.dot_dimension_numbers<[1], [0], [0], [1], [0, 0, 1, 1], [], []>} : vector<16x256xf32>, vector<256x128xf32>, vector<16x128xf32> -> vector<16x128xf32>
    %c2_62 = arith.constant 2 : index
    %c0_63 = arith.constant 0 : index
    %c0_64 = arith.constant 0 : index
    %64 = vector.load %arg3[%c2_62, %c0_63, %c0_64] : memref<3x1x128xf32, #tpu.memory_space<vmem>>, vector<1x1x128xf32>
    %65 = vector.shape_cast %64 : vector<1x1x128xf32> to vector<1x128xf32>
    %66 = vector.broadcast %65 : vector<1x128xf32> to vector<16x128xf32>
    %67 = arith.addf %63, %66 : vector<16x128xf32>
    %68 = math.tanh %67 : vector<16x128xf32>
    %c2_65 = arith.constant 2 : index
    %c0_66 = arith.constant 0 : index
    %c0_67 = arith.constant 0 : index
    %69 = vector.load %arg6[%c2_65, %c0_66, %c0_67] : memref<3x128x128xf32, #tpu.memory_space<vmem>>, vector<1x128x128xf32>
    %70 = vector.shape_cast %69 : vector<1x128x128xf32> to vector<128x128xf32>
    %cst_68 = arith.constant dense<0.000000e+00> : vector<16x128xf32>
    %71 = tpu.matmul %68, %70, %cst_68 {dimension_numbers = #tpu.dot_dimension_numbers<[1], [0], [0], [1], [0, 0, 1, 1], [], []>} : vector<16x128xf32>, vector<128x128xf32>, vector<16x128xf32> -> vector<16x128xf32>
    %72 = arith.addf %57, %71 : vector<16x128xf32>
    %73 = vector.shape_cast %72 : vector<16x128xf32> to vector<1x16x128xf32>
    %c0_69 = arith.constant 0 : index
    %c0_70 = arith.constant 0 : index
    %c0_71 = arith.constant 0 : index
    %74 = vector.load %arg8[%c0_69, %c0_70, %c0_71] : memref<1x16x128xf32, #tpu.memory_space<vmem>>, vector<1x16x128xf32>
    tpu.vector_store %arg8[%c0_69, %c0_70, %c0_71], %73 {strides = array<i32>} : memref<1x16x128xf32, #tpu.memory_space<vmem>>, vector<1x16x128xf32>,
    return
  }
  func.func @transform_0(%arg0: i32) -> (i32, i32, i32) {
    %c0_i32 = arith.constant 0 : i32
    %c0_i32_0 = arith.constant 0 : i32
    %c0_i32_1 = arith.constant 0 : i32
    return %arg0, %c0_i32, %c0_i32_0 : i32, i32, i32
  }
  func.func @transform_1(%arg0: i32) -> (i32, i32, i32) {
    %c0_i32 = arith.constant 0 : i32
    %c0_i32_0 = arith.constant 0 : i32
    %c0_i32_1 = arith.constant 0 : i32
    %c0_i32_2 = arith.constant 0 : i32
    return %c0_i32, %c0_i32_0, %c0_i32_1 : i32, i32, i32
  }
  func.func @transform_2(%arg0: i32) -> (i32, i32, i32) {
    %c0_i32 = arith.constant 0 : i32
    %c0_i32_0 = arith.constant 0 : i32
    %c0_i32_1 = arith.constant 0 : i32
    %c0_i32_2 = arith.constant 0 : i32
    return %c0_i32, %c0_i32_0, %c0_i32_1 : i32, i32, i32
  }
  func.func @transform_3(%arg0: i32) -> (i32, i32, i32) {
    %c0_i32 = arith.constant 0 : i32
    %c0_i32_0 = arith.constant 0 : i32
    %c0_i32_1 = arith.constant 0 : i32
    %c0_i32_2 = arith.constant 0 : i32
    return %c0_i32, %c0_i32_0, %c0_i32_1 : i32, i32, i32
  }
  func.func @transform_4(%arg0: i32) -> (i32, i32, i32) {
    %c0_i32 = arith.constant 0 : i32
    %c0_i32_0 = arith.constant 0 : i32
    %c0_i32_1 = arith.constant 0 : i32
    %c0_i32_2 = arith.constant 0 : i32
    return %c0_i32, %c0_i32_0, %c0_i32_1 : i32, i32, i32
  }
  func.func @transform_5(%arg0: i32) -> (i32, i32, i32) {
    %c0_i32 = arith.constant 0 : i32
    %c0_i32_0 = arith.constant 0 : i32
    %c0_i32_1 = arith.constant 0 : i32
    %c0_i32_2 = arith.constant 0 : i32
    return %c0_i32, %c0_i32_0, %c0_i32_1 : i32, i32, i32
  }
  func.func @transform_6(%arg0: i32) -> (i32, i32) {
    %c0_i32 = arith.constant 0 : i32
    %c0_i32_0 = arith.constant 0 : i32
    %c0_i32_1 = arith.constant 0 : i32
    return %c0_i32, %c0_i32_0 : i32, i32
  }
  func.func @transform_7(%arg0: i32) -> (i32, i32, i32) {
    %c0_i32 = arith.constant 0 : i32
    %c0_i32_0 = arith.constant 0 : i32
    %c0_i32_1 = arith.constant 0 : i32
    return %arg0, %c0_i32, %c0_i32_0 : i32, i32, i32
  }
}

</mosaic_0001>

<bundles_post_ra>
// kernel: simple_wavenet.1
= control target key start
LH: loop header
LB: loop body
LE: loop exit
PB: predicated region body
PF: predicated region fallthrough
CT: control target
= control target key end

     0   :  { %s2040_s24 = smov 0   ;;  %s2630_s0 = inlined_call_operand.vmem [shape: f32[2,16,128], index: 0, kind: input, shape index: {}]   ;;  %s2631_s1 = inlined_call_operand.vmem [shape: f32[3,256,128], index: 1, kind: input, shape index: {}]   ;;  %s2632_s2 = inlined_call_operand.vmem [shape: f32[3,1,128], index: 2, kind: input, shape index: {}]   ;;  %s2633_s3 = inlined_call_operand.vmem [shape: f32[3,128,128], index: 3, kind: input, shape index: {}]   ;;  %s2634_s4 = inlined_call_operand.vmem [shape: f32[3,1,128], index: 4, kind: input, shape index: {}]   ;;  %s2635_s5 = inlined_call_operand.vmem [shape: f32[3,128,128], index: 5, kind: input, shape index: {}]   ;;  %s2636_s6 = inlined_call_operand.vmem [shape: f32[1,128], index: 6, kind: input, shape index: {}]   ;;  %s2637_s7 = inlined_call_operand.vmem [shape: f32[2,16,128], index: 7, kind: output, shape index: {}]  }
   0x1 LB: > { %s1195_s25 = sadd.s32 4294967295, %s1997_s24   ;;  %p1199_p0 = scmp.ge.s32.totalorder %s1997_s24, 1  ;;  %s1997_s24 = sphi %s2040_s24, %s17_s24  }
   0x2   : > { %p237_p1 = scmp.lt.s32.totalorder %s1997_s24, 3 }
   0x4   : > { %p238_p2 = pnand %p1199_p0, %p237_p1 }
   0x5   : > { %v305_v0 = vld [vmem:[%s2631_s1 + $0x80] sm:$0xff] (!%p238_p2)  ;;  %v306_v1 = vld [vmem:[%s2631_s1 + $0x88] sm:$0xff] (!%p238_p2)  ;;  %p269_p3 = scmp.lt.s32.totalorder (!%p238_p2), %s1195_s25, 1  ;;  %v307_v5 = vld [vmem:[%s2631_s1 + $0x90] sm:$0xff] (!%p238_p2)  ;;  %v1999_v7 = vmov (!%p238_p2), 0.0  }
   0x6   : > { %241 = sbr.rel (%p238_p2) target bundleno = 1402 (0x57a), region = 48  ;;  %v289_v2 = vld [vmem:[%s2631_s1] sm:$0xff] (!%p238_p2)  ;;  %v1708_v3 = vpack.c.bf16 (!%p238_p2), %v306_v1, %v305_v0  ;;  %v290_v4 = vld [vmem:[%s2631_s1 + $0x8] sm:$0xff] (!%p238_p2)  ;;  %v308_v6 = vld [vmem:[%s2631_s1 + $0x98] sm:$0xff] (!%p238_p2)  ;;  %281 = vst [vmem:[#allocation2] sm:$0xff] (!%p238_p2), %v1999_v7 }
   0x7   : > { %v1710_v8 = vpack.c.bf16 (!%p238_p2), %v290_v4, %v289_v2  ;;  %v1712_v9 = vpack.c.bf16 (!%p238_p2), %v308_v6, %v307_v5  ;;  %v291_v10 = vld [vmem:[%s2631_s1 + $0x10] sm:$0xff] (!%p238_p2)  ;;  %v292_v11 = vld [vmem:[%s2631_s1 + $0x18] sm:$0xff] (!%p238_p2)  ;;  %v309_v12 = vld [vmem:[%s2631_s1 + $0xa0] sm:$0xff] (!%p238_p2) }
   0x8   : > { %1709 = vmatprep.subr.bf16.mxu0 (!%p238_p2), %v1708_v3  ;;  %v310_v13 = vld [vmem:[%s2631_s1 + $0xa8] sm:$0xff] (!%p238_p2)  ;;  %v1714_v14 = vpack.c.bf16 (!%p238_p2), %v292_v11, %v291_v10  ;;  %v293_v16 = vld [vmem:[%s2631_s1 + $0x20] sm:$0xff] (!%p238_p2)  ;;  %v311_v18 = vld [vmem:[%s2631_s1 + $0xb0] sm:$0xff] (!%p238_p2) }
   0x9   : > { %1711 = vmatpush3.bf16.msra.mxu0 (!%p238_p2), %v1710_v8  ;;  %v1716_v15 = vpack.c.bf16 (!%p238_p2), %v310_v13, %v309_v12  ;;  %v294_v17 = vld [vmem:[%s2631_s1 + $0x28] sm:$0xff] (!%p238_p2)  ;;  %v312_v19 = vld [vmem:[%s2631_s1 + $0xb8] sm:$0xff] (!%p238_p2)  ;;  %v295_v22 = vld [vmem:[%s2631_s1 + $0x30] sm:$0xff] (!%p238_p2) }
   0xa   : > { %1713 = vmatprep.subr.bf16.mxu0 (!%p238_p2), %v1712_v9  ;;  %v1718_v20 = vpack.c.bf16 (!%p238_p2), %v294_v17, %v293_v16  ;;  %v1720_v21 = vpack.c.bf16 (!%p238_p2), %v312_v19, %v311_v18  ;;  %v296_v23 = vld [vmem:[%s2631_s1 + $0x38] sm:$0xff] (!%p238_p2)  ;;  %v313_v24 = vld [vmem:[%s2631_s1 + $0xc0] sm:$0xff] (!%p238_p2)  ;;  %v314_v25 = vld [vmem:[%s2631_s1 + $0xc8] sm:$0xff] (!%p238_p2) }
   0xb   : > { %v405_v28 = vld [vmem:[%s2633_s3] sm:$0xff] (!%p238_p2)  ;;  %v406_v29 = vld [vmem:[%s2633_s3 + $0x8] sm:$0xff] (!%p238_p2)  ;;  %v1722_v30 = vpack.c.bf16 (!%p238_p2), %v296_v23, %v295_v22  ;;  %v407_v33 = vld [vmem:[%s2633_s3 + $0x10] sm:$0xff] (!%p238_p2)  ;;  %v1724_v34 = vpack.c.bf16 (!%p238_p2), %v314_v25, %v313_v24 }
   0xc   : > { %v297_v31 = vld [vmem:[%s2631_s1 + $0x40] sm:$0xff] (!%p238_p2)  ;;  %v1740_v32 = vpack.c.bf16 (!%p238_p2), %v406_v29, %v405_v28  ;;  %v298_v35 = vld [vmem:[%s2631_s1 + $0x48] sm:$0xff] (!%p238_p2)  ;;  %v315_v36 = vld [vmem:[%s2631_s1 + $0xd0] sm:$0xff] (!%p238_p2) }
   0xd   : > { %s2639_s25 = smov (!%p269_p3, %s1195_s25), 1  ;;  %1715 = vmatpush3.bf16.msra.mxu0 %v1714_v14  ;;  %v408_v37 = vld [vmem:[%s2633_s3 + $0x18] sm:$0xff]  ;;  %v409_v40 = vld [vmem:[%s2633_s3 + $0x20] sm:$0xff]  ;;  %v410_v41 = vld [vmem:[%s2633_s3 + $0x28] sm:$0xff]  ;;  %v1726_v42 = vpack.c.bf16 %v298_v35, %v297_v31 }
   0xe   : > { %s1327_s23 = sshll.u32 %s2639_s25, 4  ;;  %1717 = vmatprep.subr.bf16.mxu0 %v1716_v15  ;;  %v316_v38 = vld [vmem:[%s2631_s1 + $0xd8] sm:$0xff]  ;;  %1741 = vmatprep.subr.bf16.mxu1 %v1740_v32  ;;  %v1744_v39 = vpack.c.bf16 %v408_v37, %v407_v33  ;;  %v1748_v43 = vpack.c.bf16 %v410_v41, %v409_v40  ;;  %v299_v45 = vld [vmem:[%s2631_s1 + $0x50] sm:$0xff]  ;;  %v317_v47 = vld [vmem:[%s2631_s1 + $0xe0] sm:$0xff] }
   0xf   : > { %s273_s13 = scalar_lea.vmem %s2630_s0, %s1327_s23  ;;  %1743 = vmatpush3.bf16.msra.mxu1 %v1740_v32  ;;  %v1728_v44 = vpack.c.bf16 %v316_v38, %v315_v36  ;;  %v300_v46 = vld [vmem:[%s2631_s1 + $0x58] sm:$0xff]  ;;  %v318_v48 = vld [vmem:[%s2631_s1 + $0xe8] sm:$0xff]  ;;  %v301_v51 = vld [vmem:[%s2631_s1 + $0x60] sm:$0xff]  ;;  %s278_s12 = scalar_lea.vmem %s2637_s7, %s1327_s23 }
  0x10   : > { %v2110_v26 = vld [vmem:[%s273_s13] sm:$0xff]  ;;  %v2112_v27 = vld [vmem:[%s273_s13 + $0x8] sm:$0xff]  ;;  %1745 = vmatprep.subr.bf16.mxu1 %v1744_v39  ;;  %v1730_v49 = vpack.c.bf16 %v300_v46, %v299_v45  ;;  %v1732_v50 = vpack.c.bf16 %v318_v48, %v317_v47  ;;  %v319_v53 = vld [vmem:[%s2631_s1 + $0xf0] sm:$0xff] }
  0x11   : > { %284 = vst [vmem:[#allocation2 + $0x8] sm:$0xff] %v2110_v26  ;;  %392 = vmatprep.mubr.f32.mxu0 %v2110_v26  ;;  %1719 = vmatpush3.bf16.msra.mxu0 %v1718_v20  ;;  %285 = vst [vmem:[#allocation2 + $0x10] sm:$0xff] %v2112_v27  ;;  %v302_v52 = vld [vmem:[%s2631_s1 + $0x68] sm:$0xff]  ;;  %v320_v54 = vld [vmem:[%s2631_s1 + $0xf8] sm:$0xff] }
  0x12   : > { %1721 = vmatprep.subr.bf16.mxu0 %v1720_v21  ;;  %v1734_v55 = vpack.c.bf16 %v302_v52, %v301_v51  ;;  %v1736_v56 = vpack.c.bf16 %v320_v54, %v319_v53  ;;  %v303_v57 = vld [vmem:[%s2631_s1 + $0x70] sm:$0xff]  ;;  %v304_v58 = vld [vmem:[%s2631_s1 + $0x78] sm:$0xff]  ;;  %v507_v59 = vld [vmem:[%s2635_s5] sm:$0xff] }
  0x13   : > { %1747 = vmatpush3.bf16.msra.mxu1 %v1744_v39  ;;  %v508_v60 = vld [vmem:[%s2635_s5 + $0x8] sm:$0xff]  ;;  %v1738_v61 = vpack.c.bf16 %v304_v58, %v303_v57  ;;  %v509_v63 = vld [vmem:[%s2635_s5 + $0x10] sm:$0xff]  ;;  %v510_v0 = vld [vmem:[%s2635_s5 + $0x18] sm:$0xff] }
  0x14   : > { %1749 = vmatprep.subr.bf16.mxu1 %v1748_v43  ;;  %v1772_v62 = vpack.c.bf16 %v508_v60, %v507_v59  ;;  %v1776_v2 = vpack.c.bf16 %v510_v0, %v509_v63  ;;  %v511_v3 = vld [vmem:[%s2635_s5 + $0x20] sm:$0xff]  ;;  %v512_v4 = vld [vmem:[%s2635_s5 + $0x28] sm:$0xff]  ;;  %v411_v7 = vld [vmem:[%s2633_s3 + $0x30] sm:$0xff] }
  0x15   : > { %1723 = vmatpush3.bf16.msra.mxu0 %v1722_v30  ;;  %v1780_v6 = vpack.c.bf16 %v512_v4, %v511_v3  ;;  %v412_v8 = vld [vmem:[%s2633_s3 + $0x38] sm:$0xff]  ;;  %v513_v9 = vld [vmem:[%s2635_s5 + $0x30] sm:$0xff]  ;;  %v413_v13 = vld [vmem:[%s2633_s3 + $0x40] sm:$0xff] }
  0x16   : > { %1725 = vmatprep.subr.bf16.mxu0 %v1724_v34  ;;  %v1752_v10 = vpack.c.bf16 %v412_v8, %v411_v7  ;;  %v514_v11 = vld [vmem:[%s2635_s5 + $0x38] sm:$0xff]  ;;  %v414_v14 = vld [vmem:[%s2633_s3 + $0x48] sm:$0xff]  ;;  %v515_v15 = vld [vmem:[%s2635_s5 + $0x40] sm:$0xff] }
  0x17   : > { %1751 = vmatpush3.bf16.msra.mxu1 %v1748_v43  ;;  %v1784_v12 = vpack.c.bf16 %v514_v11, %v513_v9  ;;  %v1756_v16 = vpack.c.bf16 %v414_v14, %v413_v13  ;;  %v516_v17 = vld [vmem:[%s2635_s5 + $0x48] sm:$0xff]  ;;  %v415_v19 = vld [vmem:[%s2633_s3 + $0x50] sm:$0xff]  ;;  %v416_v20 = vld [vmem:[%s2633_s3 + $0x58] sm:$0xff] }
  0x18   : > { %v287_v1 = vld [vmem:[#allocation2 + $0x7] sm:$0xff]  ;;  %v288_v5 = vld [vmem:[#allocation2 + $0xf] sm:$0xff]  ;;  %1753 = vmatprep.subr.bf16.mxu1 %v1752_v10  ;;  %v1788_v18 = vpack.c.bf16 %v516_v17, %v515_v15  ;;  %v1760_v22 = vpack.c.bf16 %v416_v20, %v415_v19  ;;  %v518_v23 = vld [vmem:[%s2635_s5 + $0x58] sm:$0xff] }
  0x19   : > { %1727 = vmatpush3.bf16.msra.mxu0 %v1726_v42  ;;  %v517_v21 = vld [vmem:[%s2635_s5 + $0x50] sm:$0xff]  ;;  %v417_v25 = vld [vmem:[%s2633_s3 + $0x60] sm:$0xff]  ;;  %v418_v28 = vld [vmem:[%s2633_s3 + $0x68] sm:$0xff] }
  0x1a   : > { %1729 = vmatprep.subr.bf16.mxu0 %v1728_v44  ;;  %v1792_v24 = vpack.c.bf16 %v518_v23, %v517_v21  ;;  %v519_v29 = vld [vmem:[%s2635_s5 + $0x60] sm:$0xff]  ;;  %v1764_v30 = vpack.c.bf16 %v418_v28, %v417_v25  ;;  %v520_v31 = vld [vmem:[%s2635_s5 + $0x68] sm:$0xff]  ;;  %v419_v32 = vld [vmem:[%s2633_s3 + $0x70] sm:$0xff] }
  0x1b   : > { %1755 = vmatpush3.bf16.msra.mxu1 %v1752_v10  ;;  %v420_v33 = vld [vmem:[%s2633_s3 + $0x78] sm:$0xff]  ;;  %v1796_v34 = vpack.c.bf16 %v520_v31, %v519_v29  ;;  %v521_v36 = vld [vmem:[%s2635_s5 + $0x70] sm:$0xff]  ;;  %v1223_v39 = vld [vmem:[%s2631_s1 + $0x180] sm:$0xff] }
  0x1c   : > { %1757 = vmatprep.subr.bf16.mxu1 %v1756_v16  ;;  %v1768_v35 = vpack.c.bf16 %v420_v33, %v419_v32  ;;  %v522_v37 = vld [vmem:[%s2635_s5 + $0x78] sm:$0xff]  ;;  %v1224_v40 = vld [vmem:[%s2631_s1 + $0x188] sm:$0xff]  ;;  %v1204_v43 = vld [vmem:[%s2632_s2] ss:$0 sm:$0xff] }
  0x1d   : > { %1731 = vmatpush3.bf16.msra.mxu0 %v1730_v49  ;;  %v1800_v38 = vpack.c.bf16 %v522_v37, %v521_v36  ;;  %v1804_v41 = vpack.c.bf16 %v1224_v40, %v1223_v39  ;;  %v1207_v51 = vld [vmem:[%s2631_s1 + $0x100] sm:$0xff]  ;;  %v1208_v52 = vld [vmem:[%s2631_s1 + $0x108] sm:$0xff]  ;;  %v1225_v54 = vld [vmem:[%s2631_s1 + $0x190] sm:$0xff] }
  0x1e   : > { %1733 = vmatprep.subr.bf16.mxu0 %v1732_v50  ;;  %v1209_v58 = vld [vmem:[%s2631_s1 + $0x110] sm:$0xff]  ;;  %v1210_v59 = vld [vmem:[%s2631_s1 + $0x118] sm:$0xff]  ;;  %v1231_v9 = vld [vmem:[%s2631_s1 + $0x1c0] sm:$0xff] }
  0x1f   : > { %1759 = vmatpush3.bf16.msra.mxu1 %v1756_v16  ;;  %v1810_v63 = vpack.c.bf16 %v1210_v59, %v1209_v58  ;;  %v1229_v3 = vld [vmem:[%s2631_s1 + $0x1b0] sm:$0xff]  ;;  %v1230_v4 = vld [vmem:[%s2631_s1 + $0x1b8] sm:$0xff]  ;;  %v1232_v10 = vld [vmem:[%s2631_s1 + $0x1c8] sm:$0xff] }
  0x20   : > { %1761 = vmatprep.subr.bf16.mxu1 %v1760_v22  ;;  %v1213_v7 = vld [vmem:[%s2631_s1 + $0x130] sm:$0xff]  ;;  %v1214_v8 = vld [vmem:[%s2631_s1 + $0x138] sm:$0xff]  ;;  %v1215_v13 = vld [vmem:[%s2631_s1 + $0x140] sm:$0xff] }
  0x21   : > { %1735 = vmatpush3.bf16.msra.mxu0 %v1734_v55  ;;  %v1226_v55 = vld [vmem:[%s2631_s1 + $0x198] sm:$0xff]  ;;  %v1818_v11 = vpack.c.bf16 %v1214_v8, %v1213_v7  ;;  %v1216_v14 = vld [vmem:[%s2631_s1 + $0x148] sm:$0xff]  ;;  %v1233_v16 = vld [vmem:[%s2631_s1 + $0x1d0] sm:$0xff] }
  0x22   : > { %1737 = vmatprep.subr.bf16.mxu0 %v1736_v56  ;;  %v1806_v56 = vpack.c.bf16 %v1208_v52, %v1207_v51  ;;  %v1808_v57 = vpack.c.bf16 %v1226_v55, %v1225_v54  ;;  %v1822_v15 = vpack.c.bf16 %v1216_v14, %v1215_v13  ;;  %v1234_v17 = vld [vmem:[%s2631_s1 + $0x1d8] sm:$0xff]  ;;  %v1217_v19 = vld [vmem:[%s2631_s1 + $0x150] sm:$0xff]  ;;  %v1236_v23 = vld [vmem:[%s2631_s1 + $0x1e8] sm:$0xff] }
  0x23   : > { %1763 = vmatpush3.bf16.msra.mxu1 %v1760_v22  ;;  %v1218_v20 = vld [vmem:[%s2631_s1 + $0x158] sm:$0xff]  ;;  %v1235_v22 = vld [vmem:[%s2631_s1 + $0x1e0] sm:$0xff]  ;;  %v1220_v28 = vld [vmem:[%s2631_s1 + $0x168] sm:$0xff] }
  0x24   : > { %1765 = vmatprep.subr.bf16.mxu1 %v1764_v30  ;;  %v1826_v21 = vpack.c.bf16 %v1218_v20, %v1217_v19  ;;  %v1219_v25 = vld [vmem:[%s2631_s1 + $0x160] sm:$0xff]  ;;  %v1238_v31 = vld [vmem:[%s2631_s1 + $0x1f8] sm:$0xff]  ;;  %v1221_v32 = vld [vmem:[%s2631_s1 + $0x170] sm:$0xff] }
  0x25   : > { %1739 = vmatpush3.bf16.msra.mxu0 %v1738_v61  ;;  %v1227_v61 = vld [vmem:[%s2631_s1 + $0x1a0] sm:$0xff]  ;;  %v1830_v29 = vpack.c.bf16 %v1220_v28, %v1219_v25  ;;  %v1242_v37 = vld [vmem:[%s2633_s3 + $0x88] sm:$0xff]  ;;  %v1244_v40 = vld [vmem:[%s2633_s3 + $0x98] sm:$0xff] }
  0x26   : > { %1773 = vmatprep.subr.bf16.mxu0 %v1772_v62  ;;  %v1241_v36 = vld [vmem:[%s2633_s3 + $0x80] sm:$0xff]  ;;  %v1251_v58 = vld [vmem:[%s2633_s3 + $0xd0] sm:$0xff]  ;;  %v1252_v59 = vld [vmem:[%s2633_s3 + $0xd8] sm:$0xff] }
  0x27   : > { %1767 = vmatpush3.bf16.msra.mxu1 %v1764_v30  ;;  %v1237_v30 = vld [vmem:[%s2631_s1 + $0x1f0] sm:$0xff]  ;;  %v1836_v39 = vpack.c.bf16 %v1242_v37, %v1241_v36  ;;  %v1249_v55 = vld [vmem:[%s2633_s3 + $0xc0] sm:$0xff]  ;;  %v1292_v7 = vld [vmem:[%s2631_s1 + $0x288] sm:$0xff] }
  0x28   : > { %393 = vmatmul.mubr.f32.vlgmr.msra.gmra.mrb[0].mxu0 %v287_v1  ;;  %1769 = vmatprep.subr.bf16.mxu1 %v1768_v35  ;;  %v1211_v1 = vld [vmem:[%s2631_s1 + $0x120] sm:$0xff]  ;;  %v1832_v33 = vpack.c.bf16 %v1238_v31, %v1237_v30  ;;  %v1282_v30 = vld [vmem:[%s2631_s1 + $0x238] sm:$0xff]  ;;  %v1284_v36 = vld [vmem:[%s2631_s1 + $0x248] sm:$0xff] }
  0x29   : > { %397 = vmatprep.mubr.f32.mxu0 %v2112_v27  ;;  %1775 = vmatpush3.bf16.msra.mxu0 %v1772_v62  ;;  %v1228_v62 = vld [vmem:[%s2631_s1 + $0x1a8] sm:$0xff]  ;;  %v1275_v8 = vld [vmem:[%s2631_s1 + $0x200] sm:$0xff] }
  0x2a   : > { %1777 = vmatprep.subr.bf16.mxu0 %v1776_v2  ;;  %v1812_v0 = vpack.c.bf16 %v1228_v62, %v1227_v61  ;;  %v1253_v61 = vld [vmem:[%s2633_s3 + $0xe0] sm:$0xff]  ;;  %v1254_v62 = vld [vmem:[%s2633_s3 + $0xe8] sm:$0xff] }
  0x2b   : > { %1771 = vmatpush3.bf16.msra.mxu1 %v1768_v35  ;;  %v1299_v31 = vld [vmem:[%s2631_s1 + $0x2c0] sm:$0xff] }
  0x2c   : > { %398 = vmatmul.mubr.f32.gmra.mrb[2].mxu0 %v288_v5  ;;  %1805 = vmatprep.subr.bf16.mxu1 %v1804_v41 }
  0x2d   : > { %1779 = vmatpush3.bf16.msra.mxu0 %v1776_v2  ;;  %v1212_v2 = vld [vmem:[%s2631_s1 + $0x128] sm:$0xff] }
  0x2e   : > { %1781 = vmatprep.subr.bf16.mxu0 %v1780_v6  ;;  %v1814_v5 = vpack.c.bf16 %v1212_v2, %v1211_v1  ;;  %v1256_v1 = vld [vmem:[%s2633_s3 + $0xf8] sm:$0xff] }
  0x31   : > { %1783 = vmatpush3.bf16.msra.mxu0 %v1780_v6  ;;  %v1816_v6 = vpack.c.bf16 %v1230_v4, %v1229_v3  ;;  %v1259_v3 = vld [vmem:[%s2635_s5 + $0x80] sm:$0xff]  ;;  %v1260_v4 = vld [vmem:[%s2635_s5 + $0x88] sm:$0xff] }
  0x32   : > { %1785 = vmatprep.subr.bf16.mxu0 %v1784_v12 }
  0x35   : > { %1787 = vmatpush3.bf16.msra.mxu0 %v1784_v12  ;;  %v1820_v12 = vpack.c.bf16 %v1232_v10, %v1231_v9  ;;  %v1276_v10 = vld [vmem:[%s2631_s1 + $0x208] sm:$0xff] }
  0x36   : > { %1789 = vmatprep.subr.bf16.mxu0 %v1788_v18  ;;  %v1902_v13 = vpack.c.bf16 %v1276_v10, %v1275_v8  ;;  %v1286_v10 = vld [vmem:[%s2631_s1 + $0x258] sm:$0xff] }
  0x39   : > { %1791 = vmatpush3.bf16.msra.mxu0 %v1788_v18  ;;  %v1824_v18 = vpack.c.bf16 %v1234_v17, %v1233_v16  ;;  %v1278_v16 = vld [vmem:[%s2631_s1 + $0x218] sm:$0xff]  ;;  %v1295_v17 = vld [vmem:[%s2631_s1 + $0x2a0] sm:$0xff] }
  0x3a   : > { %1793 = vmatprep.subr.bf16.mxu0 %v1792_v24 }
  0x3d   : > { %1795 = vmatpush3.bf16.msra.mxu0 %v1792_v24  ;;  %v1828_v24 = vpack.c.bf16 %v1236_v23, %v1235_v22  ;;  %v1280_v22 = vld [vmem:[%s2631_s1 + $0x228] sm:$0xff]  ;;  %v1297_v23 = vld [vmem:[%s2631_s1 + $0x2b0] sm:$0xff] }
  0x3e   : > { %1797 = vmatprep.subr.bf16.mxu0 %v1796_v34 }
  0x41   : > { %1799 = vmatpush3.bf16.msra.mxu0 %v1796_v34  ;;  %v1222_v34 = vld [vmem:[%s2631_s1 + $0x178] sm:$0xff] }
  0x42   : > { %1801 = vmatprep.subr.bf16.mxu0 %v1800_v38  ;;  %v1834_v35 = vpack.c.bf16 %v1222_v34, %v1221_v32  ;;  %v1300_v32 = vld [vmem:[%s2631_s1 + $0x2c8] sm:$0xff] }
  0x43   : > { %v1916_v34 = vpack.c.bf16 %v1300_v32, %v1299_v31 }
  0x45   : > { %1803 = vmatpush3.bf16.msra.mxu0 %v1800_v38  ;;  %v1243_v38 = vld [vmem:[%s2633_s3 + $0x90] sm:$0xff] }
  0x46   : > { %v1840_v41 = vpack.c.bf16 %v1244_v40, %v1243_v38  ;;  %1837 = vmatprep.subr.bf16.mxu0 %v1836_v39 }
  0xfb   : > { %v1361_v42 = vpop.f32.mrb[0].mxu0 }
  0xfc   : > { %v1362_v44 = vpop.f32.mrb[1].mxu0 }
  0xfd   : > { %v1363_v45 = vadd.f32 %v1362_v44, %v1361_v42  ;;  %v1245_v42 = vld [vmem:[%s2633_s3 + $0xa0] sm:$0xff] }
  0xff   : > { %v395_v46 = vadd.f32 %v1363_v45, %v1204_v43  ;;  %v1364_v47 = vpop.f32.mrb[2].mxu0  ;;  %v1205_v45 = vld [vmem:[%s2634_s4] ss:$0 sm:$0xff] }
 0x100   : > { %v1365_v48 = vpop.f32.mrb[3].mxu0 }
 0x101   : > { %1979 = vtanh.f32 %v395_v46  ;;  %v1366_v49 = vadd.f32 %v1365_v48, %v1364_v47 }
 0x103   : > { %v400_v50 = vadd.f32 %v1366_v49, %v1204_v43  ;;  %v1246_v43 = vld [vmem:[%s2633_s3 + $0xa8] sm:$0xff] }
 0x104   : > { %v1844_v44 = vpack.c.bf16 %v1246_v43, %v1245_v42 }
 0x105   : > { %1981 = vtanh.f32 %v400_v50 }
 0x10b   : > { %v1980_v53 = vpop.eup %1979 }
 0x10c   : > { %1565 = vmatprep.mubr.f32.mxu1 %v1980_v53  ;;  %1600 = vmatprep.mubr.f32.mxu0 %v1980_v53 }
 0x10f   : > { %v1982_v60 = vpop.eup %1981 }
 0x110   : > { %1566 = vmatmul.mubr.f32.vlgmr.msra.gmra.mrb[0].mxu1 %v1982_v60  ;;  %1601 = vmatmul.mubr.f32.vlgmr.msra.gmra.mrb[4].mxu0 %v1982_v60  ;;  %v1856_v60 = vpack.c.bf16 %v1252_v59, %v1251_v58  ;;  %v1267_v58 = vld [vmem:[%s2635_s5 + $0xc0] sm:$0xff]  ;;  %v1268_v59 = vld [vmem:[%s2635_s5 + $0xc8] sm:$0xff] }
 0x111   : > { %1807 = vmatpush3.bf16.msra.mxu1 %v1806_v56  ;;  %1839 = vmatpush3.bf16.msra.mxu0 %v1836_v39  ;;  %v1250_v56 = vld [vmem:[%s2633_s3 + $0xc8] sm:$0xff]  ;;  %v1240_v39 = vld [vmem:[%s2632_s2 + $0x1] ss:$0 sm:$0xff] }
 0x112   : > { %1809 = vmatprep.subr.bf16.mxu1 %v1808_v57  ;;  %1841 = vmatprep.subr.bf16.mxu0 %v1840_v41  ;;  %v1852_v57 = vpack.c.bf16 %v1250_v56, %v1249_v55  ;;  %v1265_v55 = vld [vmem:[%s2635_s5 + $0xb0] sm:$0xff]  ;;  %v1266_v56 = vld [vmem:[%s2635_s5 + $0xb8] sm:$0xff] }
 0x115   : > { %1811 = vmatpush3.bf16.msra.mxu1 %v1810_v63  ;;  %1843 = vmatpush3.bf16.msra.mxu0 %v1840_v41  ;;  %v1860_v63 = vpack.c.bf16 %v1254_v62, %v1253_v61  ;;  %v1269_v61 = vld [vmem:[%s2635_s5 + $0xd0] sm:$0xff]  ;;  %v1270_v62 = vld [vmem:[%s2635_s5 + $0xd8] sm:$0xff] }
 0x116   : > { %1813 = vmatprep.subr.bf16.mxu1 %v1812_v0  ;;  %1845 = vmatprep.subr.bf16.mxu0 %v1844_v44  ;;  %v1255_v0 = vld [vmem:[%s2633_s3 + $0xf0] sm:$0xff] }
 0x117   : > { %v1864_v2 = vpack.c.bf16 %v1256_v1, %v1255_v0  ;;  %v1271_v0 = vld [vmem:[%s2635_s5 + $0xe0] sm:$0xff]  ;;  %v1272_v1 = vld [vmem:[%s2635_s5 + $0xe8] sm:$0xff] }
 0x119   : > { %1815 = vmatpush3.bf16.msra.mxu1 %v1814_v5  ;;  %1847 = vmatpush3.bf16.msra.mxu0 %v1844_v44  ;;  %v1868_v5 = vpack.c.bf16 %v1260_v4, %v1259_v3  ;;  %v1273_v3 = vld [vmem:[%s2635_s5 + $0xf0] sm:$0xff]  ;;  %v1274_v4 = vld [vmem:[%s2635_s5 + $0xf8] sm:$0xff] }
 0x11a   : > { %1817 = vmatprep.subr.bf16.mxu1 %v1816_v6  ;;  %v1291_v6 = vld [vmem:[%s2631_s1 + $0x280] sm:$0xff] }
 0x11b   : > { %v1900_v9 = vpack.c.bf16 %v1292_v7, %v1291_v6  ;;  %v1301_v6 = vld [vmem:[%s2631_s1 + $0x2d0] sm:$0xff]  ;;  %v1302_v7 = vld [vmem:[%s2631_s1 + $0x2d8] sm:$0xff] }
 0x11c   : > { %v1920_v8 = vpack.c.bf16 %v1302_v7, %v1301_v6  ;;  %v1206_v6 = vld [vmem:[%s2636_s6] ss:$0 sm:$0xff] }
 0x11d   : > { %1819 = vmatpush3.bf16.msra.mxu1 %v1818_v11  ;;  %v1293_v11 = vld [vmem:[%s2631_s1 + $0x290] sm:$0xff] }
 0x11e   : > { %1821 = vmatprep.subr.bf16.mxu1 %v1820_v12  ;;  %v1294_v12 = vld [vmem:[%s2631_s1 + $0x298] sm:$0xff] }
 0x11f   : > { %v1904_v14 = vpack.c.bf16 %v1294_v12, %v1293_v11  ;;  %v1303_v12 = vld [vmem:[%s2631_s1 + $0x2e0] sm:$0xff] }
 0x121   : > { %1823 = vmatpush3.bf16.msra.mxu1 %v1822_v15  ;;  %v1277_v15 = vld [vmem:[%s2631_s1 + $0x210] sm:$0xff] }
 0x122   : > { %1825 = vmatprep.subr.bf16.mxu1 %v1824_v18  ;;  %v1296_v18 = vld [vmem:[%s2631_s1 + $0x2a8] sm:$0xff]  ;;  %v1906_v19 = vpack.c.bf16 %v1278_v16, %v1277_v15  ;;  %v1287_v15 = vld [vmem:[%s2631_s1 + $0x260] sm:$0xff] }
 0x123   : > { %v1908_v20 = vpack.c.bf16 %v1296_v18, %v1295_v17  ;;  %v1288_v16 = vld [vmem:[%s2631_s1 + $0x268] sm:$0xff]  ;;  %v1305_v18 = vld [vmem:[%s2631_s1 + $0x2f0] sm:$0xff] }
 0x124   : > { %v1926_v17 = vpack.c.bf16 %v1288_v16, %v1287_v15 }
 0x125   : > { %1827 = vmatpush3.bf16.msra.mxu1 %v1826_v21  ;;  %v1279_v21 = vld [vmem:[%s2631_s1 + $0x220] sm:$0xff] }
 0x126   : > { %1829 = vmatprep.subr.bf16.mxu1 %v1828_v24  ;;  %v1298_v24 = vld [vmem:[%s2631_s1 + $0x2b8] sm:$0xff]  ;;  %v1910_v25 = vpack.c.bf16 %v1280_v22, %v1279_v21 }
 0x127   : > { %v1912_v28 = vpack.c.bf16 %v1298_v24, %v1297_v23  ;;  %v1290_v22 = vld [vmem:[%s2631_s1 + $0x278] sm:$0xff]  ;;  %v1309_v24 = vld [vmem:[%s2635_s5 + $0x100] sm:$0xff] }
 0x129   : > { %1831 = vmatpush3.bf16.msra.mxu1 %v1830_v29  ;;  %v1281_v29 = vld [vmem:[%s2631_s1 + $0x230] sm:$0xff] }
 0x12a   : > { %1833 = vmatprep.subr.bf16.mxu1 %v1832_v33  ;;  %v1914_v33 = vpack.c.bf16 %v1282_v30, %v1281_v29  ;;  %v1258_v29 = vld [vmem:[%s2634_s4 + $0x1] ss:$0 sm:$0xff] }
 0x12d   : > { %1835 = vmatpush3.bf16.msra.mxu1 %v1834_v35  ;;  %v1283_v35 = vld [vmem:[%s2631_s1 + $0x240] sm:$0xff] }
 0x12e   : > { %1901 = vmatprep.subr.bf16.mxu1 %v1900_v9  ;;  %v1918_v37 = vpack.c.bf16 %v1284_v36, %v1283_v35  ;;  %v1285_v9 = vld [vmem:[%s2631_s1 + $0x250] sm:$0xff] }
 0x12f   : > { %v1922_v11 = vpack.c.bf16 %v1286_v10, %v1285_v9  ;;  %v1311_v36 = vld [vmem:[%s2635_s5 + $0x110] sm:$0xff] }
 0x1e3   : > { %v1567_v46 = vpop.f32.mrb[0].mxu1 }
 0x1e4   : > { %v500_v47 = vadd.f32 %v1567_v46, %v1205_v45  ;;  %v494_v48 = vpop.f32.mrb[1].mxu1 }
 0x1e5   : > { %v495_v49 = vadd.f32 %v1205_v45, %v494_v48  ;;  %v1261_v48 = vld [vmem:[%s2635_s5 + $0x90] sm:$0xff] }
 0x1e6   : > { %v2377_v50 = vadd.f32 %v500_v47, %v2112_v27  ;;  %v1247_v27 = vld [vmem:[%s2633_s3 + $0xb0] sm:$0xff] }
 0x1e7   : > { %v2380_v51 = vadd.f32 %v495_v49, %v2110_v26  ;;  %v1248_v26 = vld [vmem:[%s2633_s3 + $0xb8] sm:$0xff] }
 0x1e8   : > { %506 = vst [vmem:[#allocation2 + $0x10] sm:$0xff] %v2377_v50  ;;  %v1848_v54 = vpack.c.bf16 %v1248_v26, %v1247_v27  ;;  %v1262_v49 = vld [vmem:[%s2635_s5 + $0x98] sm:$0xff]  ;;  %v1263_v27 = vld [vmem:[%s2635_s5 + $0xa0] sm:$0xff]  ;;  %v1264_v26 = vld [vmem:[%s2635_s5 + $0xa8] sm:$0xff] }
 0x1e9   : > { %505 = vst [vmem:[#allocation2 + $0x8] sm:$0xff] %v2380_v51  ;;  %713 = vmatprep.mubr.f32.mxu1 %v2380_v51 }
 0x1ea   : > { %1849 = vmatprep.subr.bf16.mxu0 %v1848_v54 }
 0x1eb   : > { %1851 = vmatpush3.bf16.msra.mxu0 %v1848_v54  ;;  %v1876_v54 = vpack.c.bf16 %v1264_v26, %v1263_v27  ;;  %v1321_v26 = vld [vmem:[%s2635_s5 + $0x160] sm:$0xff] }
 0x1ec   : > { %1853 = vmatprep.subr.bf16.mxu0 %v1852_v57 }
 0x1ef   : > { %1855 = vmatpush3.bf16.msra.mxu0 %v1852_v57  ;;  %v1880_v57 = vpack.c.bf16 %v1266_v56, %v1265_v55  ;;  %v1323_v55 = vld [vmem:[%s2635_s5 + $0x170] sm:$0xff] }
 0x1f0   : > { %v606_v52 = vld [vmem:[#allocation2 + $0x6] sm:$0xff]  ;;  %v607_v53 = vld [vmem:[#allocation2 + $0xe] sm:$0xff]  ;;  %1857 = vmatprep.subr.bf16.mxu0 %v1856_v60 }
 0x1f1   : > { %714 = vmatmul.mubr.f32.vlgmr.msra.gmra.mrb[2].mxu1 %v606_v52  ;;  %v1872_v52 = vpack.c.bf16 %v1262_v49, %v1261_v48  ;;  %v1318_v48 = vld [vmem:[%s2635_s5 + $0x148] sm:$0xff] }
 0x1f2   : > { %718 = vmatprep.mubr.f32.mxu1 %v2377_v50  ;;  %1903 = vmatpush3.bf16.msra.mxu1 %v1902_v13  ;;  %v1304_v13 = vld [vmem:[%s2631_s1 + $0x2e8] sm:$0xff] }
 0x1f3   : > { %1859 = vmatpush3.bf16.msra.mxu0 %v1856_v60  ;;  %1905 = vmatprep.subr.bf16.mxu1 %v1904_v14  ;;  %v1884_v60 = vpack.c.bf16 %v1268_v59, %v1267_v58  ;;  %v1924_v14 = vpack.c.bf16 %v1304_v13, %v1303_v12 }
 0x1f4   : > { %1861 = vmatprep.subr.bf16.mxu0 %v1860_v63 }
 0x1f5   : > { %719 = vmatmul.mubr.f32.gmra.mrb[4].mxu1 %v607_v53 }
 0x1f6   : > { %1907 = vmatpush3.bf16.msra.mxu1 %v1906_v19  ;;  %v1306_v19 = vld [vmem:[%s2631_s1 + $0x2f8] sm:$0xff] }
 0x1f7   : > { %1863 = vmatpush3.bf16.msra.mxu0 %v1860_v63  ;;  %1909 = vmatprep.subr.bf16.mxu1 %v1908_v20  ;;  %v1888_v63 = vpack.c.bf16 %v1270_v62, %v1269_v61  ;;  %v1289_v20 = vld [vmem:[%s2631_s1 + $0x270] sm:$0xff]  ;;  %v1928_v21 = vpack.c.bf16 %v1306_v19, %v1305_v18 }
 0x1f8   : > { %1865 = vmatprep.subr.bf16.mxu0 %v1864_v2  ;;  %v1930_v23 = vpack.c.bf16 %v1290_v22, %v1289_v20 }
 0x1fa   : > { %1911 = vmatpush3.bf16.msra.mxu1 %v1910_v25  ;;  %v1310_v25 = vld [vmem:[%s2635_s5 + $0x108] sm:$0xff] }
 0x1fb   : > { %1867 = vmatpush3.bf16.msra.mxu0 %v1864_v2  ;;  %1913 = vmatprep.subr.bf16.mxu1 %v1912_v28  ;;  %v1892_v2 = vpack.c.bf16 %v1272_v1, %v1271_v0  ;;  %v1932_v28 = vpack.c.bf16 %v1310_v25, %v1309_v24 }
 0x1fc   : > { %1869 = vmatprep.subr.bf16.mxu0 %v1868_v5 }
 0x1fe   : > { %1915 = vmatpush3.bf16.msra.mxu1 %v1914_v33 }
 0x1ff   : > { %1917 = vmatprep.subr.bf16.mxu1 %v1916_v34 }
 0x202   : > { %1919 = vmatpush3.bf16.msra.mxu1 %v1918_v37  ;;  %v1312_v37 = vld [vmem:[%s2635_s5 + $0x118] sm:$0xff] }
 0x203   : > { %1921 = vmatprep.subr.bf16.mxu1 %v1920_v8 }
 0x206   : > { %1923 = vmatpush3.bf16.msra.mxu1 %v1922_v11 }
 0x207   : > { %1925 = vmatprep.subr.bf16.mxu1 %v1924_v14 }
 0x20a   : > { %1927 = vmatpush3.bf16.msra.mxu1 %v1926_v17 }
 0x20b   : > { %1929 = vmatprep.subr.bf16.mxu1 %v1928_v21 }
 0x20e   : > { %1931 = vmatpush3.bf16.msra.mxu1 %v1930_v23 }
 0x20f   : > { %1933 = vmatprep.subr.bf16.mxu1 %v1932_v28 }
 0x2c4   : > { %v1435_v38 = vpop.f32.mrb[2].mxu1 }
 0x2c5   : > { %v1436_v40 = vpop.f32.mrb[3].mxu1 }
 0x2c6   : > { %v1437_v41 = vadd.f32 %v1436_v40, %v1435_v38  ;;  %v1936_v38 = vpack.c.bf16 %v1312_v37, %v1311_v36  ;;  %v1313_v40 = vld [vmem:[%s2635_s5 + $0x120] sm:$0xff] }
 0x2c8   : > { %v716_v42 = vadd.f32 %v1437_v41, %v1240_v39  ;;  %v1438_v43 = vpop.f32.mrb[4].mxu1 }
 0x2c9   : > { %v1439_v44 = vpop.f32.mrb[5].mxu1 }
 0x2ca   : > { %1983 = vtanh.f32 %v716_v42  ;;  %v1440_v45 = vadd.f32 %v1439_v44, %v1438_v43  ;;  %v1315_v44 = vld [vmem:[%s2635_s5 + $0x130] sm:$0xff] }
 0x2cc   : > { %v721_v46 = vadd.f32 %v1440_v45, %v1240_v39  ;;  %v1316_v45 = vld [vmem:[%s2635_s5 + $0x138] sm:$0xff] }
 0x2ce   : > { %1985 = vtanh.f32 %v721_v46  ;;  %v1944_v46 = vpack.c.bf16 %v1316_v45, %v1315_v44 }
 0x2d4   : > { %v1984_v47 = vpop.eup %1983 }
 0x2d5   : > { %1635 = vmatprep.mubr.f32.mxu0 %v1984_v47 }
 0x2d8   : > { %v1986_v53 = vpop.eup %1985 }
 0x2d9   : > { %1636 = vmatmul.mubr.f32.vlgmr.msra.gmra.mrb[6].mxu0 %v1986_v53 }
 0x2da   : > { %1871 = vmatpush3.bf16.msra.mxu0 %v1868_v5  ;;  %1670 = vmatprep.mubr.f32.mxu0 %v1984_v47  ;;  %v1896_v5 = vpack.c.bf16 %v1274_v4, %v1273_v3  ;;  %v1317_v47 = vld [vmem:[%s2635_s5 + $0x140] sm:$0xff] }
 0x2db   : > { %1873 = vmatprep.subr.bf16.mxu0 %v1872_v52  ;;  %v1948_v49 = vpack.c.bf16 %v1318_v48, %v1317_v47 }
 0x2de   : > { %1875 = vmatpush3.bf16.msra.mxu0 %v1872_v52  ;;  %v1319_v52 = vld [vmem:[%s2635_s5 + $0x150] sm:$0xff] }
 0x2df   : > { %1877 = vmatprep.subr.bf16.mxu0 %v1876_v54 }
 0x2e2   : > { %1879 = vmatpush3.bf16.msra.mxu0 %v1876_v54  ;;  %v1322_v54 = vld [vmem:[%s2635_s5 + $0x168] sm:$0xff] }
 0x2e3   : > { %1881 = vmatprep.subr.bf16.mxu0 %v1880_v57  ;;  %v1956_v56 = vpack.c.bf16 %v1322_v54, %v1321_v26 }
 0x2e6   : > { %1883 = vmatpush3.bf16.msra.mxu0 %v1880_v57  ;;  %v1324_v57 = vld [vmem:[%s2635_s5 + $0x178] sm:$0xff] }
 0x2e7   : > { %1885 = vmatprep.subr.bf16.mxu0 %v1884_v60  ;;  %v1960_v58 = vpack.c.bf16 %v1324_v57, %v1323_v55 }
 0x2ea   : > { %1887 = vmatpush3.bf16.msra.mxu0 %v1884_v60  ;;  %v1308_v60 = vld [vmem:[%s2632_s2 + $0x2] ss:$0 sm:$0xff] }
 0x2eb   : > { %1889 = vmatprep.subr.bf16.mxu0 %v1888_v63 }
 0x2ee   : > { %1891 = vmatpush3.bf16.msra.mxu0 %v1888_v63 }
 0x2ef   : > { %1893 = vmatprep.subr.bf16.mxu0 %v1892_v2 }
 0x2f2   : > { %1895 = vmatpush3.bf16.msra.mxu0 %v1892_v2 }
 0x2f3   : > { %1897 = vmatprep.subr.bf16.mxu0 %v1896_v5 }
 0x2f6   : > { %1899 = vmatpush3.bf16.msra.mxu0 %v1896_v5 }
 0x2f9   : > { %1671 = vmatmul.mubr.f32.vlgmr.msra.gmra.mrb[4].mxu0 %v1986_v53  ;;  %v1320_v53 = vld [vmem:[%s2635_s5 + $0x158] sm:$0xff] }
 0x2fa   : > { %v1952_v27 = vpack.c.bf16 %v1320_v53, %v1319_v52 }
 0x3ac   : > { %v1637_v30 = vpop.f32.mrb[6].mxu0 }
 0x3ad   : > { %v823_v31 = vadd.f32 %v1637_v30, %v1258_v29  ;;  %v817_v32 = vpop.f32.mrb[7].mxu0 }
 0x3ae   : > { %v818_v33 = vadd.f32 %v1258_v29, %v817_v32 }
 0x3af   : > { %v827_v34 = vadd.f32 %v823_v31, %v2377_v50  ;;  %v1314_v50 = vld [vmem:[%s2635_s5 + $0x128] sm:$0xff] }
 0x3b0   : > { %v826_v35 = vadd.f32 %v818_v33, %v2380_v51  ;;  %v1940_v51 = vpack.c.bf16 %v1314_v50, %v1313_v40 }
 0x3b1   : > { %829 = vst [vmem:[#allocation2 + $0x10] sm:$0xff] %v827_v34 }
 0x3b2   : > { %828 = vst [vmem:[#allocation2 + $0x8] sm:$0xff] %v826_v35  ;;  %1031 = vmatprep.mubr.f32.mxu1 %v826_v35 }
 0x3b9   : > { %v924_v39 = vld [vmem:[#allocation2 + $0x4] sm:$0xff]  ;;  %v925_v41 = vld [vmem:[#allocation2 + $0xc] sm:$0xff] }
 0x3ba   : > { %1032 = vmatmul.mubr.f32.vlgmr.msra.gmra.mrb[6].mxu1 %v924_v39 }
 0x3bb   : > { %1036 = vmatprep.mubr.f32.mxu1 %v827_v34  ;;  %1935 = vmatpush3.bf16.msra.mxu1 %v1932_v28 }
 0x3bc   : > { %1937 = vmatprep.subr.bf16.mxu1 %v1936_v38 }
 0x3be   : > { %1037 = vmatmul.mubr.f32.gmra.mrb[8].mxu1 %v925_v41 }
 0x3bf   : > { %1939 = vmatpush3.bf16.msra.mxu1 %v1936_v38 }
 0x3c0   : > { %1941 = vmatprep.subr.bf16.mxu1 %v1940_v51 }
 0x3c3   : > { %1943 = vmatpush3.bf16.msra.mxu1 %v1940_v51 }
 0x3c4   : > { %1945 = vmatprep.subr.bf16.mxu1 %v1944_v46 }
 0x3c7   : > { %1947 = vmatpush3.bf16.msra.mxu1 %v1944_v46 }
 0x3c8   : > { %1949 = vmatprep.subr.bf16.mxu1 %v1948_v49 }
 0x3cb   : > { %1951 = vmatpush3.bf16.msra.mxu1 %v1948_v49 }
 0x3cc   : > { %v1672_v42 = vpop.f32.mrb[4].mxu0  ;;  %1953 = vmatprep.subr.bf16.mxu1 %v1952_v27 }
 0x3cd   : > { %v913_v43 = vpop.f32.mrb[5].mxu0  ;;  %v1964_v7 = vadd.f32 %v1672_v42, %v1206_v6 }
 0x3ce   : > { %v1966_v8 = vadd.f32 %v1206_v6, %v913_v43 }
 0x3cf   : > { %1955 = vmatpush3.bf16.msra.mxu1 %v1952_v27 }
 0x3d0   : > { %1957 = vmatprep.subr.bf16.mxu1 %v1956_v56 }
 0x3d3   : > { %1959 = vmatpush3.bf16.msra.mxu1 %v1956_v56 }
 0x3d4   : > { %1961 = vmatprep.subr.bf16.mxu1 %v1960_v58 }
 0x3d7   : > { %1963 = vmatpush3.bf16.msra.mxu1 %v1960_v58 }
 0x48d   : > { %v1509_v59 = vpop.f32.mrb[6].mxu1 }
 0x48e   : > { %v1510_v61 = vpop.f32.mrb[7].mxu1 }
 0x48f   : > { %v1511_v62 = vadd.f32 %v1510_v61, %v1509_v59 }
 0x491   : > { %v1034_v63 = vadd.f32 %v1511_v62, %v1308_v60  ;;  %v1512_v0 = vpop.f32.mrb[8].mxu1 }
 0x492   : > { %v1513_v1 = vpop.f32.mrb[9].mxu1 }
 0x493   : > { %1987 = vtanh.f32 %v1034_v63  ;;  %v1514_v2 = vadd.f32 %v1513_v1, %v1512_v0 }
 0x495   : > { %v1039_v3 = vadd.f32 %v1514_v2, %v1308_v60 }
 0x497   : > { %1989 = vtanh.f32 %v1039_v3 }
 0x49d   : > { %v1988_v4 = vpop.eup %1987 }
 0x49e   : > { %1705 = vmatprep.mubr.f32.mxu1 %v1988_v4 }
 0x4a1   : > { %v1990_v5 = vpop.eup %1989 }
 0x4a2   : > { %1706 = vmatmul.mubr.f32.vlgmr.msra.gmra.mrb[10].mxu1 %v1990_v5 }
 0x575   : > { %v1707_v9 = vpop.f32.mrb[10].mxu1 }
 0x576   : > { %v1965_v10 = vadd.f32 %v1964_v7, %v1707_v9  ;;  %v1127_v11 = vpop.f32.mrb[11].mxu1 }
 0x577   : > { %v1967_v12 = vadd.f32 %v1966_v8, %v1127_v11 }
 0x578   : > { %1139 = vst [vmem:[%s278_s12 + $0x8] sm:$0xff] %v1965_v10 }
 0x579   : > { %1138 = vst [vmem:[%s278_s12] sm:$0xff] %v1967_v12 }
 0x57a PF: > { %s17_s24 = sadd.s32 1, %s1997_s24  }
 0x57b   : > { %p14_p4 = scmp.ge.s32.totalorder %s17_s24, 4  }
 0x57d   :  { %16 = sbr.rel (!%p14_p4) target bundleno = 1 (0x1), region = 86 }

</bundles_post_ra>
